<compile_context>
chip_gen: v6e
topology: v6e:2x2x1
jax: 0.10.0
libtpu: 0.0.40
codegen_flags: <defaults>
</compile_context>

<pallas_src>
import functools

import jax
import jax.numpy as jnp
from jax.experimental import pallas as pl
from jax.experimental.pallas import tpu as pltpu


def _mlp_kernel(W, x_ref, w1_ref, cc_ref, mask_ref, w2_ref, b2_ref, o_ref):
    """Fused fc1(1x1+BN) -> dw3x3(+bias) -> ReLU -> fc2(1x1+BN) on one chunk.

    x_ref:    (Cin, L)    bf16 lane-dense input chunk (L = bt * HWp)
    w1_ref:   (Chid, Cin) bf16 BN-folded fc1 weight
    cc_ref:   (Chid, 16)  f32  packed constants: cols 0..8 dw taps (dh*3+dw),
                               col 9 = folded fc1 bias, col 10 = dw bias
    mask_ref: (9, 1, L)   f32  per-tap validity masks (precomputed)
    w2_ref:   (Cout, Chid) bf16 BN-folded fc2 weight
    b2_ref:   (Cout, 1)   f32  BN-folded fc2 bias
    o_ref:    (Cout, L)   f32  lane-dense output chunk
    """
    L = x_ref.shape[1]
    cc = cc_ref[...]                                          # (Chid, 16)

    # ---- fc1: 1x1 conv + folded BN (MXU, bf16 in / f32 acc) ----
    hid = jnp.dot(w1_ref[...], x_ref[...],
                  preferred_element_type=jnp.float32)         # (Chid, L)
    hid = hid + cc[:, 9:10]

    # ---- depthwise 3x3 (padding=1): 9 x (XLU roll + mask + VPU FMA) ----
    acc = cc[:, 4:5] * hid                # centre tap: no shift, no mask
    for oh in (-1, 0, 1):
        for ow in (-1, 0, 1):
            if oh == 0 and ow == 0:
                continue
            d = oh * W + ow                         # source offset in lanes
            tap = (oh + 1) * 3 + (ow + 1)
            win = pltpu.roll(hid, (-d) % L, 1)      # win[j] = hid[j + d]
            acc = acc + cc[:, tap:tap + 1] * (win * mask_ref[tap])

    # dw bias + ReLU.  Dropout(p=0.0, eval) is the identity.
    acc = jnp.maximum(acc + cc[:, 10:11], 0.0)

    # ---- fc2: 1x1 conv + folded BN (MXU, bf16 in / f32 acc) ----
    out = jnp.dot(w2_ref[...], acc.astype(w2_ref.dtype),
                  preferred_element_type=jnp.float32)         # (Cout, L)
    o_ref[...] = (out + b2_ref[...]).astype(o_ref.dtype)


def mlp_pallas(x, w1, b1, kdw, bdw, w2, b2):
    """x: (B, Cin, H, W) NCHW.

    w1/b1, w2/b2: BN-folded 1x1 conv weights/biases, (Chid,Cin)/(Chid,),
    (Cout,Chid)/(Cout,).  kdw: depthwise weight (Chid, 1, 3, 3), bdw: (Chid,).
    Returns (B, Cout, H, W) in x.dtype.
    """
    B, Cin, H, W = x.shape
    HW = H * W
    Chid = w1.shape[0]
    Cout = w2.shape[0]
    out_dtype = x.dtype
    f32 = jnp.float32
    cdt = jnp.bfloat16                     # HBM activations / MXU operands

    # Lane-pad the per-image spatial extent to a multiple of 128 so every
    # VMEM tile and store is full-width.
    HWp = ((HW + 127) // 128) * 128

    # Images per grid step: cap the f32 hidden block (Chid * L * 4B) at ~2 MiB
    # (safe under v7x's 64 MiB VMEM / v5e's 16 MiB scoped default), and keep
    # >= 2 parallel grid steps when B >= 2 so both v7x TensorCores get work.
    bt = max(1, (2 * 1024 * 1024) // (Chid * HWp * 4))
    if B >= 2:
        bt = min(bt, B // 2)
    bt = max(1, min(bt, B))
    while B % bt:
        bt -= 1
    L = bt * HWp
    Ltot = B * HWp
    grid = (B // bt,)

    # ---- activations: NCHW -> (Cin, B*HWp), lane-dense, bf16 ----
    x3 = jnp.transpose(x, (1, 0, 2, 3)).reshape(Cin, B, HW)
    if HWp != HW:
        x3 = jnp.pad(x3, ((0, 0), (0, 0), (0, HWp - HW)))
    x2 = x3.reshape(Cin, Ltot).astype(cdt)

    # ---- weights / packed per-channel constants ----
    w1c = w1.astype(cdt)                              # (Chid, Cin)
    w2c = w2.astype(cdt)                              # (Cout, Chid)
    b2c = b2.reshape(Cout, 1).astype(f32)

    cconst = jnp.zeros((Chid, 16), f32)
    cconst = cconst.at[:, 0:9].set(kdw.reshape(Chid, 9).astype(f32))
    cconst = cconst.at[:, 9].set(b1.astype(f32))
    cconst = cconst.at[:, 10].set(bdw.astype(f32))

    # ---- per-tap validity masks over one chunk (same for every chunk,
    #      since chunks start on image boundaries) ----
    idx = jnp.arange(HWp)
    row = idx // W
    col = idx % W
    top_ok = row >= 1
    bot_ok = row <= H - 2
    left_ok = col >= 1
    right_ok = col <= W - 2
    ones = jnp.ones((HWp,), bool)
    per_tap = []
    for oh in (-1, 0, 1):
        for ow in (-1, 0, 1):
            m = ones
            if oh == -1:
                m = m & top_ok
            if oh == 1:
                m = m & bot_ok
            if ow == -1:
                m = m & left_ok
            if ow == 1:
                m = m & right_ok
            per_tap.append(m)
    mask9 = jnp.stack(per_tap, 0).astype(f32)         # (9, HWp)
    mask9 = jnp.tile(mask9, (1, bt)).reshape(9, 1, L)  # (9, 1, L)

    out2 = pl.pallas_call(
        functools.partial(_mlp_kernel, W),
        out_shape=jax.ShapeDtypeStruct((Cout, Ltot), f32),
        grid_spec=pltpu.PrefetchScalarGridSpec(
            num_scalar_prefetch=0,
            grid=grid,
            in_specs=[
                pl.BlockSpec((Cin, L), lambda i: (0, i)),
                pl.BlockSpec((Chid, Cin), lambda i: (0, 0)),
                pl.BlockSpec((Chid, 16), lambda i: (0, 0)),
                pl.BlockSpec((9, 1, L), lambda i: (0, 0, 0)),
                pl.BlockSpec((Cout, Chid), lambda i: (0, 0)),
                pl.BlockSpec((Cout, 1), lambda i: (0, 0)),
            ],
            out_specs=pl.BlockSpec((Cout, L), lambda i: (0, i)),
        ),
        compiler_params=pltpu.CompilerParams(
            dimension_semantics=("parallel",),
        ),
    )(x2, w1c, cconst, mask9, w2c, b2c)

    out = out2.reshape(Cout, B, HWp)[:, :, :HW]
    out = jnp.transpose(out.reshape(Cout, B, H, W), (1, 0, 2, 3))
    return out.astype(out_dtype)


# ----------------------------- helpers / reference -----------------------------

def fold_conv_bn(w, gamma, beta, mean, var, eps=1e-5):
    """Fold an inference BatchNorm into a preceding bias-free 1x1 conv."""
    scale = gamma / jnp.sqrt(var + eps)
    return w * scale[:, None], beta - mean * scale


def _bn(x_nchw, gamma, beta, mean, var, eps=1e-5):
    inv = gamma / jnp.sqrt(var + eps)
    return (x_nchw * inv[None, :, None, None]
            + (beta - mean * inv)[None, :, None, None])


def mlp_ref(x, w1_raw, bn1, kdw_oihw, bdw, w2_raw, bn2):
    """Pure-JAX reference mirroring the PyTorch Mlp (eval mode)."""
    hi = jax.lax.Precision.HIGHEST
    h = jnp.einsum('oc,bchw->bohw', w1_raw, x, precision=hi)
    h = _bn(h, *bn1)
    h = jax.lax.conv_general_dilated(
        h, kdw_oihw, window_strides=(1, 1), padding=((1, 1), (1, 1)),
        dimension_numbers=('NCHW', 'OIHW', 'NCHW'),
        feature_group_count=h.shape[1], precision=hi)
    h = h + bdw[None, :, None, None]
    h = jnp.maximum(h, 0.0)
    o = jnp.einsum('oc,bchw->bohw', w2_raw, h, precision=hi)
    return _bn(o, *bn2)


if __name__ == "__main__":
    key = jax.random.PRNGKey(0)
    B, Cin, H, W = 2, 4, 16, 16
    Chid, Cout = 32, 4        # hidden_features=32, out_features=in_features

    ks = jax.random.split(key, 13)
    x = jax.random.normal(ks[0], (B, Cin, H, W), dtype=jnp.float32)

    # fc1 = Conv2d_BN(Cin, Chid)
    w1_raw = 0.5 * jax.random.normal(ks[1], (Chid, Cin), jnp.float32)
    g1 = 1.0 + 0.1 * jax.random.normal(ks[2], (Chid,), jnp.float32)
    be1 = 0.1 * jax.random.normal(ks[3], (Chid,), jnp.float32)
    m1 = 0.1 * jax.random.normal(ks[4], (Chid,), jnp.float32)
    v1 = jax.random.uniform(ks[5], (Chid,), jnp.float32, 0.5, 1.5)

    # dwconv = Conv2d(Chid, Chid, 3, 1, 1, groups=Chid, bias=True)
    kdw_raw = 0.2 * jax.random.normal(ks[6], (Chid, 1, 3, 3), jnp.float32)
    bdw = 0.1 * jax.random.normal(ks[7], (Chid,), jnp.float32)

    # fc2 = Conv2d_BN(Chid, Cout)
    w2_raw = 0.2 * jax.random.normal(ks[8], (Cout, Chid), jnp.float32)
    g2 = 1.0 + 0.1 * jax.random.normal(ks[9], (Cout,), jnp.float32)
    be2 = 0.1 * jax.random.normal(ks[10], (Cout,), jnp.float32)
    m2 = 0.1 * jax.random.normal(ks[11], (Cout,), jnp.float32)
    v2 = jax.random.uniform(ks[12], (Cout,), jnp.float32, 0.5, 1.5)

    # Fold the BatchNorms into the 1x1 convs (inference semantics).
    w1, b1 = fold_conv_bn(w1_raw, g1, be1, m1, v1)
    w2, b2 = fold_conv_bn(w2_raw, g2, be2, m2, v2)

    out = mlp_pallas(x, w1, b1, kdw_raw, bdw, w2, b2)
    out = jax.block_until_ready(out)

    ref = mlp_ref(x, w1_raw, (g1, be1, m1, v1), kdw_raw, bdw,
                  w2_raw, (g2, be2, m2, v2))
    assert out.shape == ref.shape and out.dtype == ref.dtype
    max_err = float(jnp.max(jnp.abs(out - ref)))
    # Tolerance accounts for bf16 activation/weight operands (f32 accumulate).
    assert jnp.allclose(out, ref, atol=5e-2, rtol=5e-2), (
        f"Pallas Mlp mismatch vs reference, max abs err = {max_err}")

    print("KERNEL_OK")
</pallas_src>

<mosaic_0001>
module attributes {stable_mosaic.version = 11 : i64} {
  func.func @_mlp_kernel(%arg0: i32, %arg1: memref<4x256xbf16, #tpu.memory_space<vmem>>, %arg2: memref<32x4xbf16, #tpu.memory_space<vmem>>, %arg3: memref<32x16xf32, #tpu.memory_space<vmem>>, %arg4: memref<9x1x256xf32, #tpu.memory_space<vmem>>, %arg5: memref<4x32xbf16, #tpu.memory_space<vmem>>, %arg6: memref<4x1xf32, #tpu.memory_space<vmem>>, %arg7: memref<4x256xf32, #tpu.memory_space<vmem>>) attributes {dimension_semantics = [#tpu.dimension_semantics<parallel>], iteration_bounds = array<i64: 2>, scalar_prefetch = 0 : i64, scratch_operands = 0 : i64, tpu.core_type = #tpu.core_type<tc>, window_params = [{transform_indices = @transform_0, window_bounds = array<i64: 4, 256>}, {pipeline_mode = #tpu.pipeline_mode<synchronous>, transform_indices = @transform_1, window_bounds = array<i64: 32, 4>}, {pipeline_mode = #tpu.pipeline_mode<synchronous>, transform_indices = @transform_2, window_bounds = array<i64: 32, 16>}, {pipeline_mode = #tpu.pipeline_mode<synchronous>, transform_indices = @transform_3, window_bounds = array<i64: 9, 1, 256>}, {pipeline_mode = #tpu.pipeline_mode<synchronous>, transform_indices = @transform_4, window_bounds = array<i64: 4, 32>}, {pipeline_mode = #tpu.pipeline_mode<synchronous>, transform_indices = @transform_5, window_bounds = array<i64: 4, 1>}, {transform_indices = @transform_6, window_bounds = array<i64: 4, 256>}]} {
    %c0 = arith.constant 0 : index
    %c0_0 = arith.constant 0 : index
    %0 = vector.load %arg3[%c0, %c0_0] : memref<32x16xf32, #tpu.memory_space<vmem>>, vector<32x16xf32>
    %c0_1 = arith.constant 0 : index
    %c0_2 = arith.constant 0 : index
    %1 = vector.load %arg2[%c0_1, %c0_2] : memref<32x4xbf16, #tpu.memory_space<vmem>>, vector<32x4xbf16>
    %c0_3 = arith.constant 0 : index
    %c0_4 = arith.constant 0 : index
    %2 = vector.load %arg1[%c0_3, %c0_4] : memref<4x256xbf16, #tpu.memory_space<vmem>>, vector<4x256xbf16>
    %cst = arith.constant dense<0.000000e+00> : vector<32x256xf32>
    %3 = tpu.matmul %1, %2, %cst {dimension_numbers = #tpu.dot_dimension_numbers<[1], [0], [0], [1], [0, 0, 1, 1], [], []>} : vector<32x4xbf16>, vector<4x256xbf16>, vector<32x256xf32> -> vector<32x256xf32>
    %4 = vector.extract_strided_slice %0 {offsets = [0, 9], sizes = [32, 1], strides = [1, 1]} : vector<32x16xf32> to vector<32x1xf32>
    %5 = vector.broadcast %4 : vector<32x1xf32> to vector<32x256xf32>
    %6 = arith.addf %3, %5 : vector<32x256xf32>
    %7 = vector.extract_strided_slice %0 {offsets = [0, 4], sizes = [32, 1], strides = [1, 1]} : vector<32x16xf32> to vector<32x1xf32>
    %8 = vector.broadcast %7 : vector<32x1xf32> to vector<32x256xf32>
    %9 = arith.mulf %8, %6 : vector<32x256xf32>
    %c17_i32 = arith.constant 17 : i32
    %10 = tpu.dynamic_rotate %6 by %c17_i32 dim 1 : vector<32x256xf32>, i32 -> vector<32x256xf32>
    %11 = vector.extract_strided_slice %0 {offsets = [0, 0], sizes = [32, 1], strides = [1, 1]} : vector<32x16xf32> to vector<32x1xf32>
    %c0_5 = arith.constant 0 : index
    %c0_6 = arith.constant 0 : index
    %c0_7 = arith.constant 0 : index
    %12 = vector.load %arg4[%c0_5, %c0_6, %c0_7] : memref<9x1x256xf32, #tpu.memory_space<vmem>>, vector<1x1x256xf32>
    %13 = vector.shape_cast %12 : vector<1x1x256xf32> to vector<1x256xf32>
    %14 = vector.broadcast %13 : vector<1x256xf32> to vector<32x256xf32>
    %15 = arith.mulf %10, %14 : vector<32x256xf32>
    %16 = vector.broadcast %11 : vector<32x1xf32> to vector<32x256xf32>
    %17 = arith.mulf %16, %15 : vector<32x256xf32>
    %18 = arith.addf %9, %17 : vector<32x256xf32>
    %c16_i32 = arith.constant 16 : i32
    %19 = tpu.dynamic_rotate %6 by %c16_i32 dim 1 : vector<32x256xf32>, i32 -> vector<32x256xf32>
    %20 = vector.extract_strided_slice %0 {offsets = [0, 1], sizes = [32, 1], strides = [1, 1]} : vector<32x16xf32> to vector<32x1xf32>
    %c1 = arith.constant 1 : index
    %c0_8 = arith.constant 0 : index
    %c0_9 = arith.constant 0 : index
    %21 = vector.load %arg4[%c1, %c0_8, %c0_9] : memref<9x1x256xf32, #tpu.memory_space<vmem>>, vector<1x1x256xf32>
    %22 = vector.shape_cast %21 : vector<1x1x256xf32> to vector<1x256xf32>
    %23 = vector.broadcast %22 : vector<1x256xf32> to vector<32x256xf32>
    %24 = arith.mulf %19, %23 : vector<32x256xf32>
    %25 = vector.broadcast %20 : vector<32x1xf32> to vector<32x256xf32>
    %26 = arith.mulf %25, %24 : vector<32x256xf32>
    %27 = arith.addf %18, %26 : vector<32x256xf32>
    %c15_i32 = arith.constant 15 : i32
    %28 = tpu.dynamic_rotate %6 by %c15_i32 dim 1 : vector<32x256xf32>, i32 -> vector<32x256xf32>
    %29 = vector.extract_strided_slice %0 {offsets = [0, 2], sizes = [32, 1], strides = [1, 1]} : vector<32x16xf32> to vector<32x1xf32>
    %c2 = arith.constant 2 : index
    %c0_10 = arith.constant 0 : index
    %c0_11 = arith.constant 0 : index
    %30 = vector.load %arg4[%c2, %c0_10, %c0_11] : memref<9x1x256xf32, #tpu.memory_space<vmem>>, vector<1x1x256xf32>
    %31 = vector.shape_cast %30 : vector<1x1x256xf32> to vector<1x256xf32>
    %32 = vector.broadcast %31 : vector<1x256xf32> to vector<32x256xf32>
    %33 = arith.mulf %28, %32 : vector<32x256xf32>
    %34 = vector.broadcast %29 : vector<32x1xf32> to vector<32x256xf32>
    %35 = arith.mulf %34, %33 : vector<32x256xf32>
    %36 = arith.addf %27, %35 : vector<32x256xf32>
    %c1_i32 = arith.constant 1 : i32
    %37 = tpu.dynamic_rotate %6 by %c1_i32 dim 1 : vector<32x256xf32>, i32 -> vector<32x256xf32>
    %38 = vector.extract_strided_slice %0 {offsets = [0, 3], sizes = [32, 1], strides = [1, 1]} : vector<32x16xf32> to vector<32x1xf32>
    %c3 = arith.constant 3 : index
    %c0_12 = arith.constant 0 : index
    %c0_13 = arith.constant 0 : index
    %39 = vector.load %arg4[%c3, %c0_12, %c0_13] : memref<9x1x256xf32, #tpu.memory_space<vmem>>, vector<1x1x256xf32>
    %40 = vector.shape_cast %39 : vector<1x1x256xf32> to vector<1x256xf32>
    %41 = vector.broadcast %40 : vector<1x256xf32> to vector<32x256xf32>
    %42 = arith.mulf %37, %41 : vector<32x256xf32>
    %43 = vector.broadcast %38 : vector<32x1xf32> to vector<32x256xf32>
    %44 = arith.mulf %43, %42 : vector<32x256xf32>
    %45 = arith.addf %36, %44 : vector<32x256xf32>
    %c255_i32 = arith.constant 255 : i32
    %46 = tpu.dynamic_rotate %6 by %c255_i32 dim 1 : vector<32x256xf32>, i32 -> vector<32x256xf32>
    %47 = vector.extract_strided_slice %0 {offsets = [0, 5], sizes = [32, 1], strides = [1, 1]} : vector<32x16xf32> to vector<32x1xf32>
    %c5 = arith.constant 5 : index
    %c0_14 = arith.constant 0 : index
    %c0_15 = arith.constant 0 : index
    %48 = vector.load %arg4[%c5, %c0_14, %c0_15] : memref<9x1x256xf32, #tpu.memory_space<vmem>>, vector<1x1x256xf32>
    %49 = vector.shape_cast %48 : vector<1x1x256xf32> to vector<1x256xf32>
    %50 = vector.broadcast %49 : vector<1x256xf32> to vector<32x256xf32>
    %51 = arith.mulf %46, %50 : vector<32x256xf32>
    %52 = vector.broadcast %47 : vector<32x1xf32> to vector<32x256xf32>
    %53 = arith.mulf %52, %51 : vector<32x256xf32>
    %54 = arith.addf %45, %53 : vector<32x256xf32>
    %c241_i32 = arith.constant 241 : i32
    %55 = tpu.dynamic_rotate %6 by %c241_i32 dim 1 : vector<32x256xf32>, i32 -> vector<32x256xf32>
    %56 = vector.extract_strided_slice %0 {offsets = [0, 6], sizes = [32, 1], strides = [1, 1]} : vector<32x16xf32> to vector<32x1xf32>
    %c6 = arith.constant 6 : index
    %c0_16 = arith.constant 0 : index
    %c0_17 = arith.constant 0 : index
    %57 = vector.load %arg4[%c6, %c0_16, %c0_17] : memref<9x1x256xf32, #tpu.memory_space<vmem>>, vector<1x1x256xf32>
    %58 = vector.shape_cast %57 : vector<1x1x256xf32> to vector<1x256xf32>
    %59 = vector.broadcast %58 : vector<1x256xf32> to vector<32x256xf32>
    %60 = arith.mulf %55, %59 : vector<32x256xf32>
    %61 = vector.broadcast %56 : vector<32x1xf32> to vector<32x256xf32>
    %62 = arith.mulf %61, %60 : vector<32x256xf32>
    %63 = arith.addf %54, %62 : vector<32x256xf32>
    %c240_i32 = arith.constant 240 : i32
    %64 = tpu.dynamic_rotate %6 by %c240_i32 dim 1 : vector<32x256xf32>, i32 -> vector<32x256xf32>
    %65 = vector.extract_strided_slice %0 {offsets = [0, 7], sizes = [32, 1], strides = [1, 1]} : vector<32x16xf32> to vector<32x1xf32>
    %c7 = arith.constant 7 : index
    %c0_18 = arith.constant 0 : index
    %c0_19 = arith.constant 0 : index
    %66 = vector.load %arg4[%c7, %c0_18, %c0_19] : memref<9x1x256xf32, #tpu.memory_space<vmem>>, vector<1x1x256xf32>
    %67 = vector.shape_cast %66 : vector<1x1x256xf32> to vector<1x256xf32>
    %68 = vector.broadcast %67 : vector<1x256xf32> to vector<32x256xf32>
    %69 = arith.mulf %64, %68 : vector<32x256xf32>
    %70 = vector.broadcast %65 : vector<32x1xf32> to vector<32x256xf32>
    %71 = arith.mulf %70, %69 : vector<32x256xf32>
    %72 = arith.addf %63, %71 : vector<32x256xf32>
    %c239_i32 = arith.constant 239 : i32
    %73 = tpu.dynamic_rotate %6 by %c239_i32 dim 1 : vector<32x256xf32>, i32 -> vector<32x256xf32>
    %74 = vector.extract_strided_slice %0 {offsets = [0, 8], sizes = [32, 1], strides = [1, 1]} : vector<32x16xf32> to vector<32x1xf32>
    %c8 = arith.constant 8 : index
    %c0_20 = arith.constant 0 : index
    %c0_21 = arith.constant 0 : index
    %75 = vector.load %arg4[%c8, %c0_20, %c0_21] : memref<9x1x256xf32, #tpu.memory_space<vmem>>, vector<1x1x256xf32>
    %76 = vector.shape_cast %75 : vector<1x1x256xf32> to vector<1x256xf32>
    %77 = vector.broadcast %76 : vector<1x256xf32> to vector<32x256xf32>
    %78 = arith.mulf %73, %77 : vector<32x256xf32>
    %79 = vector.broadcast %74 : vector<32x1xf32> to vector<32x256xf32>
    %80 = arith.mulf %79, %78 : vector<32x256xf32>
    %81 = arith.addf %72, %80 : vector<32x256xf32>
    %82 = vector.extract_strided_slice %0 {offsets = [0, 10], sizes = [32, 1], strides = [1, 1]} : vector<32x16xf32> to vector<32x1xf32>
    %83 = vector.broadcast %82 : vector<32x1xf32> to vector<32x256xf32>
    %84 = arith.addf %81, %83 : vector<32x256xf32>
    %cst_22 = arith.constant 0.000000e+00 : f32
    %85 = vector.broadcast %cst_22 : f32 to vector<32x256xf32>
    %86 = arith.maximumf %84, %85 : vector<32x256xf32>
    %c0_23 = arith.constant 0 : index
    %c0_24 = arith.constant 0 : index
    %87 = vector.load %arg5[%c0_23, %c0_24] : memref<4x32xbf16, #tpu.memory_space<vmem>>, vector<4x32xbf16>
    %88 = arith.truncf %86 : vector<32x256xf32> to vector<32x256xbf16>
    %cst_25 = arith.constant dense<0.000000e+00> : vector<4x256xf32>
    %89 = tpu.matmul %87, %88, %cst_25 {dimension_numbers = #tpu.dot_dimension_numbers<[1], [0], [0], [1], [0, 0, 1, 1], [], []>} : vector<4x32xbf16>, vector<32x256xbf16>, vector<4x256xf32> -> vector<4x256xf32>
    %c0_26 = arith.constant 0 : index
    %c0_27 = arith.constant 0 : index
    %90 = vector.load %arg6[%c0_26, %c0_27] : memref<4x1xf32, #tpu.memory_space<vmem>>, vector<4x1xf32>
    %91 = vector.broadcast %90 : vector<4x1xf32> to vector<4x256xf32>
    %92 = arith.addf %89, %91 : vector<4x256xf32>
    %c0_28 = arith.constant 0 : index
    %c0_29 = arith.constant 0 : index
    %93 = vector.load %arg7[%c0_28, %c0_29] : memref<4x256xf32, #tpu.memory_space<vmem>>, vector<4x256xf32>
    tpu.vector_store %arg7[%c0_28, %c0_29], %92 {strides = array<i32>} : memref<4x256xf32, #tpu.memory_space<vmem>>, vector<4x256xf32>,
    return
  }
  func.func @transform_0(%arg0: i32) -> (i32, i32) {
    %c0_i32 = arith.constant 0 : i32
    %c0_i32_0 = arith.constant 0 : i32
    return %c0_i32, %arg0 : i32, i32
  }
  func.func @transform_1(%arg0: i32) -> (i32, i32) {
    %c0_i32 = arith.constant 0 : i32
    %c0_i32_0 = arith.constant 0 : i32
    %c0_i32_1 = arith.constant 0 : i32
    return %c0_i32, %c0_i32_0 : i32, i32
  }
  func.func @transform_2(%arg0: i32) -> (i32, i32) {
    %c0_i32 = arith.constant 0 : i32
    %c0_i32_0 = arith.constant 0 : i32
    %c0_i32_1 = arith.constant 0 : i32
    return %c0_i32, %c0_i32_0 : i32, i32
  }
  func.func @transform_3(%arg0: i32) -> (i32, i32, i32) {
    %c0_i32 = arith.constant 0 : i32
    %c0_i32_0 = arith.constant 0 : i32
    %c0_i32_1 = arith.constant 0 : i32
    %c0_i32_2 = arith.constant 0 : i32
    return %c0_i32, %c0_i32_0, %c0_i32_1 : i32, i32, i32
  }
  func.func @transform_4(%arg0: i32) -> (i32, i32) {
    %c0_i32 = arith.constant 0 : i32
    %c0_i32_0 = arith.constant 0 : i32
    %c0_i32_1 = arith.constant 0 : i32
    return %c0_i32, %c0_i32_0 : i32, i32
  }
  func.func @transform_5(%arg0: i32) -> (i32, i32) {
    %c0_i32 = arith.constant 0 : i32
    %c0_i32_0 = arith.constant 0 : i32
    %c0_i32_1 = arith.constant 0 : i32
    return %c0_i32, %c0_i32_0 : i32, i32
  }
  func.func @transform_6(%arg0: i32) -> (i32, i32) {
    %c0_i32 = arith.constant 0 : i32
    %c0_i32_0 = arith.constant 0 : i32
    return %c0_i32, %arg0 : i32, i32
  }
}

</mosaic_0001>

<bundles_post_ra>
// kernel: tpu_custom_call.1
= control target key start
LH: loop header
LB: loop body
LE: loop exit
PB: predicated region body
PF: predicated region fallthrough
CT: control target
= control target key end

     0   :  { %11 = vsyncpa [#allocation3], 0  ;;  %s2226_s0 = inlined_call_operand.vmem [shape: bf16[4,512], index: 0, kind: input, shape index: {}]   ;;  %s2227_s1 = inlined_call_operand.vmem [shape: bf16[32,4], index: 1, kind: input, shape index: {}]   ;;  %s2228_s2 = inlined_call_operand.vmem [shape: f32[32,16], index: 2, kind: input, shape index: {}]   ;;  %s2229_s3 = inlined_call_operand.vmem [shape: f32[9,1,256], index: 3, kind: input, shape index: {}]   ;;  %s2230_s4 = inlined_call_operand.vmem [shape: bf16[4,32], index: 4, kind: input, shape index: {}]   ;;  %s2231_s5 = inlined_call_operand.vmem [shape: f32[4,1], index: 5, kind: input, shape index: {}]   ;;  %s2232_s6 = inlined_call_operand.hbm [shape: f32[4,512], index: 6, kind: output, shape index: {}]  }
   0x1   :  { %13 = vsyncpa [#allocation3 + $0x1], 0  ;;  %s1421_s21 = smov 0   ;;  %s1423_s22 = smov 0  }
   0x2   :  { %s1425_s23 = smov 0   ;;  %s1427_s24 = smov 0  }
   0x3 LB: > { %s1442_s25 = sadd.s32 4294967295, %s1364_s24   ;;  %s1185_s26 = sadd.s32 4294967294, %s1364_s24   ;;  %s1364_s24 = sphi %s1427_s24, %s2294_s24   ;;  %s1360_s23 = sphi %s1425_s23, %s2293_s23   ;;  %s1356_s22 = sphi %s1423_s22, %s2292_s22   ;;  %s1352_s21 = sphi %s1421_s21, %s2291_s21  }
   0x4   : > { %s1446_s27 = sadd.s32 1, %s1364_s24   ;;  %s157_s28 = sadd.s32 1, %s1360_s23 }
   0x5   : > { %s154_s29 = ssub.s32 %s1364_s24, %s1446_s27  ;;  %p167_p0 = scmp.ne.s32.totalorder %s1360_s23, %s1356_s22 }
   0x6   : > { %p155_p1 = scmp.eq.s32.totalorder %s154_s29, 0  ;;  %p168_p2 = scmp.eq.s32.totalorder %s1442_s25, 1 }
   0x7   : > { %p173_p3 = scmp.ne.s32.totalorder %s1356_s22, %s1352_s21  ;;  %p174_p4 = scmp.eq.s32.totalorder %s1185_s26, 1 }
   0x8   : > { %s1457_s30 = scalar_select %p155_p1, %s1360_s23, %s157_s28  }
   0x9   : > { %p1459_p5 = por %p168_p2, %p167_p0  ;;  %p1463_p6 = por %p174_p4, %p173_p3 }
   0xa   : > { %p1188_p7 = scmp.ge.s32.totalorder %s1364_s24, 1  ;;  %p216_p8 = scmp.lt.s32.totalorder %s1364_s24, 3 }
   0xc   : > { %p217_p9 = pnand %p1188_p7, %p216_p8 }
   0xe   : > { %220 = sbr.rel (%p217_p9) target bundleno = 745 (0x2e9), region = 44 }
  0x13   : > { %s1190_s9 = sshll.u32 %s1442_s25, 1  ;;  %v1366_v0 = vmov 0   ;;  %v1475_v1 = vld [vmem:[%s2228_s2] sm:$0xff]  ;;  %v1367_v2 = vmov 9   ;;  %v1480_v3 = vld [vmem:[%s2228_s2 + $0x10] sm:$0xff]  ;;  %vm309_vm0 = vcmask 1041408  }
  0x14   : > { %p247_p10 = scmp.lt.s32.totalorder %s1190_s9, 3  ;;  %348 = vmatprep.mubr.bf16.mxu0 %v1366_v0  ;;  %1097 = vmatprep.mubr.bf16.mxu1 %v1366_v0  ;;  %v1487_v4 = vld [vmem:[%s2228_s2 + $0x8] sm:$0xff]  ;;  %v1495_v6 = vld [vmem:[%s2228_s2 + $0x18] sm:$0xff]  ;;  %v1302_v9 = vld [vmem:[%s2227_s1] sm:$0xff]   ;;  %vm302_vm1 = vcmask 31744   ;;  %v1368_v10 = vmov 4  }
  0x15   : > { %1271 = vset.pattern.permute.xlu1 %v1367_v2  ;;  %1270 = vset.pattern.permute.xlu0 %v1367_v2  ;;  %v1303_v11 = vld [vmem:[%s2227_s1 + $0x8] sm:$0xff]   ;;  %v1369_v12 = vmov 1   ;;  %v1370_v13 = vmov 2   ;;  %v1371_v14 = vmov 3   ;;  %v1372_v15 = vmov 5   ;;  %s1376_s11 = smov 17  }
  0x16   : > { %s2296_s9 = smov (!%p247_p10, %s1190_s9), 3  ;;  %265 = vperm.xlu1 %1271, %v1475_v1   ;;  %275 = vperm.xlu0 %1270, %v1480_v3   ;;  %v1373_v16 = vmov 6   ;;  %v1374_v17 = vmov 7   ;;  %v1375_v18 = vmov 8   ;;  %s1377_s12 = smov 16   ;;  %vm1061_vm10 = vcmask 261120  }
  0x17   : > { %s1191_s14 = sshll.u32 %s2296_s9, 1  ;;  %s1378_s13 = smov 15  }
  0x18   : > { %s250_s19 = scalar_lea.vmem %s2226_s0, %s1191_s14  ;;  %s1379_s14 = smov 1  }
  0x19   : > { %v1194_v5 = vld.sshfl [vmem:[%s250_s19] sm:$0x33 pattern:$0x76325410]  ;;  %s1380_s15 = smov 127   ;;  %s1381_s16 = smov 113  }
  0x1a   : > { %v301_v7 = vcombine.high %v1194_v5, %v1194_v5  ;;  %v311_v8 = vsel %vm309_vm0, %v1194_v5, 0  ;;  %270 = vperm.xlu1 %1271, %v1487_v4   ;;  %280 = vperm.xlu0 %1270, %v1495_v6   ;;  %s1382_s17 = smov 112   ;;  %s1383_s18 = smov 111  }
  0x1b   : > { %s243_s9 = sand.u32 1, %s1356_s22  }
  0x1c   : > { %1195 = vmatprep.subr.msk.bf16.mxu0 %vm309_vm0, %v301_v7  ;;  %v2233_v7 = vmov 10   ;;  %s1189_s10 = sshll.u32 %s243_s9, 3 }
  0x1d   : > { %331 = vmatpush1.bf16.msra.mxu0 %v311_v8 }
  0x1e   : > { %1272 = vset.pattern.permute.xlu1 %v1368_v10  ;;  %1274 = vset.pattern.permute.xlu0 %v1366_v0 }
  0x1f   : > { %382 = vperm.xlu1 %1272, %v1495_v6   ;;  %453 = vperm.xlu0 %1274, %v1495_v6  }
  0x20   : > { %1196 = vmatmul.mubr.msk.bf16.vlgmr.msra.gmra.mxu0 %vm302_vm1, %v1302_v9 }
  0x21   : > { %358 = vmatprep.mubr.bf16.mxu0 %v1366_v0 }
  0x23   : > { %1273 = vset.pattern.permute.xlu1 %v1366_v0  ;;  %1275 = vset.pattern.permute.xlu0 %v1368_v10 }
  0x24   : > { %449 = vperm.xlu1 %1273, %v1480_v3   ;;  %378 = vperm.xlu0 %1275, %v1480_v3  }
  0x28   : > { %1197 = vmatmul.mubr.msk.bf16.gmra.mxu0 %vm302_vm1, %v1303_v11  ;;  %1276 = vset.pattern.permute.xlu1 %v1369_v12 }
  0x29   : > { %531 = vperm.xlu1 %1276, %v1495_v6   ;;  %374 = vperm.xlu0 %1275, %v1487_v4  }
  0x2d   : > { %1277 = vset.pattern.permute.xlu1 %v1368_v10  ;;  %1278 = vset.pattern.permute.xlu0 %v1369_v12 }
  0x2e   : > { %370 = vperm.xlu1 %1277, %v1475_v1   ;;  %527 = vperm.xlu0 %1278, %v1480_v3  }
  0x32   : > { %1279 = vset.pattern.permute.xlu1 %v1366_v0  ;;  %523 = vperm.xlu0 %1278, %v1487_v4  }
  0x33   : > { %441 = vperm.xlu1 %1279, %v1475_v1  }
  0x36   : > { %1282 = vset.pattern.permute.xlu0 %v1370_v13 }
  0x37   : > { %445 = vperm.xlu1 %1279, %v1487_v4   ;;  %605 = vperm.xlu0 %1282, %v1480_v3  }
  0x3b   : > { %1280 = vset.pattern.permute.xlu1 %v1370_v13  ;;  %601 = vperm.xlu0 %1282, %v1487_v4  }
  0x3c   : > { %609 = vperm.xlu1 %1280, %v1495_v6  }
  0x3f   : > { %1285 = vset.pattern.permute.xlu0 %v1371_v14 }
  0x40   : > { %1281 = vset.pattern.permute.xlu1 %v1369_v12  ;;  %683 = vperm.xlu0 %1285, %v1480_v3  }
  0x41   : > { %519 = vperm.xlu1 %1281, %v1475_v1  }
  0x44   : > { %679 = vperm.xlu0 %1285, %v1487_v4  }
  0x45   : > { %1283 = vset.pattern.permute.xlu1 %v1371_v14 }
  0x46   : > { %687 = vperm.xlu1 %1283, %v1495_v6  }
  0x48   : > { %1288 = vset.pattern.permute.xlu0 %v1372_v15 }
  0x49   : > { %761 = vperm.xlu0 %1288, %v1480_v3  }
  0x4a   : > { %1284 = vset.pattern.permute.xlu1 %v1370_v13 }
  0x4b   : > { %597 = vperm.xlu1 %1284, %v1475_v1  }
  0x4d   : > { %757 = vperm.xlu0 %1288, %v1487_v4  }
  0x4f   : > { %1286 = vset.pattern.permute.xlu1 %v1372_v15 }
  0x50   : > { %765 = vperm.xlu1 %1286, %v1495_v6  }
  0x51   : > { %1291 = vset.pattern.permute.xlu0 %v1373_v16 }
  0x52   : > { %839 = vperm.xlu0 %1291, %v1480_v3  }
  0x54   : > { %1287 = vset.pattern.permute.xlu1 %v1371_v14 }
  0x55   : > { %675 = vperm.xlu1 %1287, %v1475_v1  }
  0x56   : > { %835 = vperm.xlu0 %1291, %v1487_v4  }
  0x59   : > { %1289 = vset.pattern.permute.xlu1 %v1373_v16 }
  0x5a   : > { %843 = vperm.xlu1 %1289, %v1495_v6   ;;  %1294 = vset.pattern.permute.xlu0 %v1374_v17 }
  0x5b   : > { %917 = vperm.xlu0 %1294, %v1480_v3  }
  0x5e   : > { %1290 = vset.pattern.permute.xlu1 %v1372_v15 }
  0x5f   : > { %753 = vperm.xlu1 %1290, %v1475_v1   ;;  %913 = vperm.xlu0 %1294, %v1487_v4  }
  0x63   : > { %1292 = vset.pattern.permute.xlu1 %v1374_v17  ;;  %1297 = vset.pattern.permute.xlu0 %v1375_v18 }
  0x64   : > { %921 = vperm.xlu1 %1292, %v1495_v6   ;;  %995 = vperm.xlu0 %1297, %v1480_v3  }
  0x68   : > { %1293 = vset.pattern.permute.xlu1 %v1373_v16 }
  0x69   : > { %831 = vperm.xlu1 %1293, %v1475_v1  }
  0x6d   : > { %1295 = vset.pattern.permute.xlu1 %v1375_v18 }
  0x6e   : > { %999 = vperm.xlu1 %1295, %v1495_v6  }
  0x72   : > { %1296 = vset.pattern.permute.xlu1 %v1374_v17 }
  0x73   : > { %909 = vperm.xlu1 %1296, %v1475_v1  }
  0x77   : > { %1298 = vset.pattern.permute.xlu1 %v1375_v18  ;;  %v409_v18 = vlaneseq }
  0x91   : > { %v266_v19 = vpop.permute.xlu1 %265  ;;  %v276_v27 = vpop.permute.xlu0 %275 }
  0x95   : > { %v271_v23 = vpop.permute.xlu1 %270  ;;  %v1569_v29 = vpop.permute.xlu0 %280 }
  0x9a   : > { %v1557_v26 = vpop.permute.xlu1 %382  ;;  %v1579_v33 = vpop.permute.xlu0 %453 }
  0x9b   : > { %2254 = vst [vmem:[#allocation5_spill] sm:$0xff] %v1557_v26  ;;  %2256 = vst [vmem:[#allocation7_spill] sm:$0xff] %v1579_v33 }
  0x9f   : > { %v1563_v28 = vpop.permute.xlu1 %449  ;;  %v1593_v36 = vpop.permute.xlu0 %378 }
  0xa4   : > { %v1575_v30 = vpop.permute.xlu1 %531  ;;  %v1601_v38 = vpop.permute.xlu0 %374 }
  0xa5   : > { %2255 = vst [vmem:[#allocation6_spill] sm:$0xff] %v1575_v30 }
  0xa9   : > { %v1587_v35 = vpop.permute.xlu1 %370  ;;  %v1613_v40 = vpop.permute.xlu0 %527 }
  0xad   : > { %v1623_v44 = vpop.permute.xlu0 %523 }
  0xae   : > { %v1599_v37 = vpop.permute.xlu1 %441 }
  0xb2   : > { %v1607_v39 = vpop.permute.xlu1 %445  ;;  %v1635_v46 = vpop.permute.xlu0 %605 }
  0xb6   : > { %v1645_v50 = vpop.permute.xlu0 %601 }
  0xb7   : > { %v1615_v41 = vpop.permute.xlu1 %609 }
  0xb8   : > { %2257 = vst [vmem:[#allocation8_spill] sm:$0xff] %v1615_v41 }
  0xbb   : > { %v1657_v52 = vpop.permute.xlu0 %683 }
  0xbc   : > { %v1629_v45 = vpop.permute.xlu1 %519  ;;  %2259 = vst [vmem:[#allocation10_spill] sm:$0xff] %v1657_v52 }
  0xbf   : > { %v1665_v54 = vpop.permute.xlu0 %679 }
  0xc1   : > { %v1639_v49 = vpop.permute.xlu1 %687 }
  0xc2   : > { %2258 = vst [vmem:[#allocation9_spill] sm:$0xff] %v1639_v49 }
  0xc4   : > { %v1677_v56 = vpop.permute.xlu0 %761 }
  0xc5   : > { %2261 = vst [vmem:[#allocation12_spill] sm:$0xff] %v1677_v56 }
  0xc6   : > { %v1651_v51 = vpop.permute.xlu1 %597 }
  0xc8   : > { %v1688_v60 = vpop.permute.xlu0 %757 }
  0xcb   : > { %v1659_v53 = vpop.permute.xlu1 %765 }
  0xcc   : > { %2260 = vst [vmem:[#allocation11_spill] sm:$0xff] %v1659_v53 }
  0xcd   : > { %v1700_v62 = vpop.permute.xlu0 %839 }
  0xce   : > { %2264 = vst [vmem:[#allocation15_spill] sm:$0xff] %v1700_v62 }
  0xd0   : > { %v1671_v55 = vpop.permute.xlu1 %675 }
  0xd1   : > { %v1708_v2 = vpop.permute.xlu0 %835 }
  0xd5   : > { %v1682_v59 = vpop.permute.xlu1 %843 }
  0xd6   : > { %2263 = vst [vmem:[#allocation14_spill] sm:$0xff] %v1682_v59  ;;  %v1718_v8 = vpop.permute.xlu0 %917 }
  0xd7   : > { %2266 = vst [vmem:[#allocation17_spill] sm:$0xff] %v1718_v8 }
  0xda   : > { %v1694_v61 = vpop.permute.xlu1 %753  ;;  %v1727_v10 = vpop.permute.xlu0 %913 }
  0xdb   : > { %2268 = vst [vmem:[#allocation19_spill] sm:$0xff] %v1727_v10  ;;  %v1198_v10 = vld [vmem:[%s2229_s3 + $0x2] sm:$0x3] }
  0xdf   : > { %v1702_v63 = vpop.permute.xlu1 %921  ;;  %v1739_v13 = vpop.permute.xlu0 %995 }
  0xe0   : > { %v350_v20 = vpop.f32.mrf.mxu0  ;;  %2265 = vst [vmem:[#allocation16_spill] sm:$0xff] %v1702_v63  ;;  %2271 = vst [vmem:[#allocation22_spill] sm:$0xff] %v1739_v13 }
  0xe1   : > { %v1543_v21 = vadd.f32 %v350_v20, %v266_v19  ;;  %v423_v20 = vshrl.u32 %v409_v18, 7 }
  0xe2   : > { %v352_v22 = vpop.f32.mrf.mxu0 }
  0xe3   : > { %393 = vrot.lane.b32.xlu1 %v1543_v21, %s1376_s11  ;;  %v1577_v31 = vadd.f32 %v352_v22, %v266_v19 }
  0xe4   : > { %v354_v24 = vpop.f32.mrf.mxu0  ;;  %v1713_v5 = vpop.permute.xlu1 %831 }
  0xe5   : > { %v1547_v25 = vadd.f32 %v354_v24, %v271_v23  ;;  %v1764_v24 = vand.u32 127, %v409_v18  ;;  %v385_v18 = vmul.f32 %v1587_v35, %v1543_v21 }
  0xe6   : > { %v356_v32 = vpop.f32.mrf.mxu0 }
  0xe7   : > { %395 = vrot.lane.b32.xlu0 %v1547_v25, %s1376_s11  ;;  %472 = vrot.lane.b32.xlu1 %v1543_v21, %s1377_s12  ;;  %v1585_v34 = vadd.f32 %v356_v32, %v271_v23  ;;  %v420_v32 = vld [vmem:[%s2229_s3] sm:$0x3]  ;;  %vm411_vm2 = vcmp.lt.s32.totalorder %v1764_v24, 17  ;;  %vm488_vm3 = vcmp.lt.s32.totalorder %v1764_v24, 16  ;;  %vm566_vm4 = vcmp.lt.s32.totalorder %v1764_v24, 15 }
  0xe8   : > { %v360_v42 = vpop.f32.mrf.mxu0  ;;  %vm644_vm5 = vcmp.lt.s32.totalorder %v1764_v24, 1  ;;  %vm722_vm6 = vcmp.lt.s32.totalorder %v1764_v24, 127  ;;  %vm800_vm7 = vcmp.lt.s32.totalorder %v1764_v24, 113  ;;  %vm878_vm8 = vcmp.lt.s32.totalorder %v1764_v24, 112 }
  0xe9   : > { %v1617_v43 = vadd.f32 %v360_v42, %v276_v27  ;;  %v1721_v9 = vpop.permute.xlu1 %999  ;;  %v388_v41 = vmul.f32 %v1601_v38, %v1585_v34  ;;  %vm956_vm9 = vcmp.lt.s32.totalorder %v1764_v24, 111 }
  0xea   : > { %v362_v47 = vpop.f32.mrf.mxu0  ;;  %2267 = vst [vmem:[#allocation18_spill] sm:$0xff] %v1721_v9  ;;  %v387_v9 = vmul.f32 %v1601_v38, %v1547_v25 }
  0xeb   : > { %474 = vrot.lane.b32.xlu0 %v1547_v25, %s1377_s12  ;;  %550 = vrot.lane.b32.xlu1 %v1543_v21, %s1378_s13  ;;  %v1637_v48 = vadd.f32 %v362_v47, %v276_v27  ;;  %v1766_v27 = vsub.s32 0, %v423_v20 }
  0xec   : > { %v364_v57 = vpop.f32.mrf.mxu0 }
  0xed   : > { %v1680_v58 = vadd.f32 %v364_v57, %v1569_v29  ;;  %v1781_v57 = vrot.slane %v420_v32, %v1766_v27 }
  0xee   : > { %v366_v11 = vpop.f32.mrf.mxu0  ;;  %v1731_v12 = vpop.permute.xlu1 %909 }
  0xef   : > { %552 = vrot.lane.b32.xlu0 %v1547_v25, %s1378_s13  ;;  %628 = vrot.lane.b32.xlu1 %v1543_v21, %s1379_s14  ;;  %2262 = vst [vmem:[#allocation13_spill] sm:$0xff] %v1680_v58  ;;  %2269 = vst [vmem:[#allocation20_spill] sm:$0xff] %v1731_v12  ;;  %v1199_v12 = vld [vmem:[%s2229_s3 + $0x4] sm:$0x3] }
  0xf3   : > { %630 = vrot.lane.b32.xlu0 %v1547_v25, %s1379_s14  ;;  %706 = vrot.lane.b32.xlu1 %v1543_v21, %s1380_s15 }
  0xf7   : > { %708 = vrot.lane.b32.xlu0 %v1547_v25, %s1380_s15  ;;  %784 = vrot.lane.b32.xlu1 %v1543_v21, %s1381_s16 }
  0xfb   : > { %786 = vrot.lane.b32.xlu0 %v1547_v25, %s1381_s16  ;;  %401 = vrot.lane.b32.xlu1 %v1577_v31, %s1376_s11 }
  0xff   : > { %403 = vrot.lane.b32.xlu0 %v1585_v34, %s1376_s11  ;;  %480 = vrot.lane.b32.xlu1 %v1577_v31, %s1377_s12 }
 0x103   : > { %482 = vrot.lane.b32.xlu0 %v1585_v34, %s1377_s12  ;;  %558 = vrot.lane.b32.xlu1 %v1577_v31, %s1378_s13 }
 0x107   : > { %560 = vrot.lane.b32.xlu0 %v1585_v34, %s1378_s13  ;;  %636 = vrot.lane.b32.xlu1 %v1577_v31, %s1379_s14 }
 0x10b   : > { %638 = vrot.lane.b32.xlu0 %v1585_v34, %s1379_s14  ;;  %714 = vrot.lane.b32.xlu1 %v1577_v31, %s1380_s15 }
 0x10f   : > { %716 = vrot.lane.b32.xlu0 %v1585_v34, %s1380_s15  ;;  %792 = vrot.lane.b32.xlu1 %v1577_v31, %s1381_s16 }
 0x113   : > { %794 = vrot.lane.b32.xlu0 %v1585_v34, %s1381_s16  ;;  %397 = vrot.lane.b32.xlu1 %v1617_v43, %s1376_s11 }
 0x117   : > { %476 = vrot.lane.b32.xlu0 %v1617_v43, %s1377_s12  ;;  %554 = vrot.lane.b32.xlu1 %v1617_v43, %s1378_s13 }
 0x11b   : > { %405 = vrot.lane.b32.xlu0 %v1637_v48, %s1376_s11  ;;  %632 = vrot.lane.b32.xlu1 %v1617_v43, %s1379_s14 }
 0x11f   : > { %484 = vrot.lane.b32.xlu0 %v1637_v48, %s1377_s12  ;;  %710 = vrot.lane.b32.xlu1 %v1617_v43, %s1380_s15 }
 0x123   : > { %562 = vrot.lane.b32.xlu0 %v1637_v48, %s1378_s13  ;;  %788 = vrot.lane.b32.xlu1 %v1617_v43, %s1381_s16 }
 0x127   : > { %640 = vrot.lane.b32.xlu0 %v1637_v48, %s1379_s14  ;;  %866 = vrot.lane.b32.xlu1 %v1617_v43, %s1382_s17 }
 0x12b   : > { %718 = vrot.lane.b32.xlu0 %v1637_v48, %s1380_s15  ;;  %944 = vrot.lane.b32.xlu1 %v1617_v43, %s1383_s18 }
 0x12f   : > { %796 = vrot.lane.b32.xlu0 %v1637_v48, %s1381_s16  ;;  %864 = vrot.lane.b32.xlu1 %v1547_v25, %s1382_s17 }
 0x133   : > { %874 = vrot.lane.b32.xlu0 %v1637_v48, %s1382_s17  ;;  %399 = vrot.lane.b32.xlu1 %v1680_v58, %s1376_s11 }
 0x137   : > { %952 = vrot.lane.b32.xlu0 %v1637_v48, %s1383_s18  ;;  %478 = vrot.lane.b32.xlu1 %v1680_v58, %s1377_s12 }
 0x13b   : > { %862 = vrot.lane.b32.xlu0 %v1543_v21, %s1382_s17  ;;  %556 = vrot.lane.b32.xlu1 %v1680_v58, %s1378_s13 }
 0x13f   : > { %870 = vrot.lane.b32.xlu0 %v1577_v31, %s1382_s17  ;;  %634 = vrot.lane.b32.xlu1 %v1680_v58, %s1379_s14 }
 0x143   : > { %987 = vperm.xlu0 %1297, %v1475_v1   ;;  %712 = vrot.lane.b32.xlu1 %v1680_v58, %s1380_s15 }
 0x147   : > { %1300 = vset.pattern.permute.xlu0 %v2233_v7  ;;  %790 = vrot.lane.b32.xlu1 %v1680_v58, %s1381_s16 }
 0x148   : > { %1031 = vperm.xlu0 %1300, %v1495_v6   ;;  %v1735_v6 = vadd.f32 %v366_v11, %v1569_v29  ;;  %v1768_v29 = vsub.s32 1, %v423_v20 }
 0x14a   : > { %2270 = vst [vmem:[#allocation21_spill] sm:$0xff] %v1735_v6  ;;  %v1784_v11 = vrot.slane %v420_v32, %v1768_v29  ;;  %v386_v32 = vmul.f32 %v1587_v35, %v1577_v31  ;;  %v1815_v35 = vrot.slane %v1198_v10, %v1768_v29 }
 0x14b   : > { %868 = vrot.lane.b32.xlu1 %v1680_v58, %s1382_s17 }
 0x14c   : > { %948 = vrot.lane.b32.xlu0 %v1577_v31, %s1383_s18  ;;  %v1812_v31 = vrot.slane %v1198_v10, %v1766_v27  ;;  %v1201_v10 = vld [vmem:[%s2229_s3 + $0xa] sm:$0x3] }
 0x14f   : > { %946 = vrot.lane.b32.xlu1 %v1680_v58, %s1383_s18 }
 0x150   : > { %1019 = vperm.xlu0 %1300, %v1475_v1  }
 0x153   : > { %407 = vrot.lane.b32.xlu1 %v1735_v6, %s1376_s11  ;;  %s1211_s11 = sshll.u32 %s1442_s25, 7  ;;  %s1385_s25 = smov [#allocation2]  }
 0x154   : > { %1301 = vset.pattern.permute.xlu0 %v1366_v0  ;;  %s1308_s19 = sshll.u32 %s1385_s25, 4  ;;  %s1309_s19 = int_to_ptr.vmem [resolvable:$false] %s1308_s19 }
 0x155   : > { %v394_v14 = vpop.permute.xlu1 %393  ;;  %s1310_s20 = scalar_lea.vmem %s1309_s19, 256 }
 0x157   : > { %486 = vrot.lane.b32.xlu1 %v1735_v6, %s1377_s12  ;;  %s245_s12 = scalar_lea.vmem [#allocation2], %s1189_s10 }
 0x159   : > { %v396_v15 = vpop.permute.xlu0 %395  ;;  %v473_v16 = vpop.permute.xlu1 %472 }
 0x15b   : > { %564 = vrot.lane.b32.xlu1 %v1735_v6, %s1378_s13  ;;  %s1126_s13 = sshll.u32 %s245_s12, 4  ;;  %s1127_s13 = int_to_ptr.vmem [resolvable:$true] %s1126_s13 }
 0x15c   : > { %p1311_p0 = scmp.lt.s32.totalorder %s1127_s13, %s1309_s19 }
 0x15d   : > { %v1746_v1 = vpop.permute.xlu0 %474  ;;  %v1748_v17 = vpop.permute.xlu1 %550 }
 0x15f   : > { %642 = vrot.lane.b32.xlu1 %v1735_v6, %s1379_s14 }
 0x161   : > { %v1752_v19 = vpop.permute.xlu0 %552  ;;  %v1754_v0 = vpop.permute.xlu1 %628 }
 0x163   : > { %720 = vrot.lane.b32.xlu1 %v1735_v6, %s1380_s15 }
 0x165   : > { %v1758_v22 = vpop.permute.xlu0 %630  ;;  %v1760_v23 = vpop.permute.xlu1 %706 }
 0x167   : > { %798 = vrot.lane.b32.xlu1 %v1735_v6, %s1381_s16  ;;  %s2191_s16 = scalar_lea.hbm %s2232_s6, %s1211_s11 }
 0x169   : > { %v1773_v42 = vpop.permute.xlu0 %708  ;;  %v1775_v47 = vpop.permute.xlu1 %784 }
 0x16b   : > { %876 = vrot.lane.b32.xlu1 %v1735_v6, %s1382_s17 }
 0x16d   : > { %v1788_v20 = vpop.permute.xlu0 %786  ;;  %v402_v7 = vpop.permute.xlu1 %401 }
 0x16e   : > { %v412_v63 = vsel %vm411_vm2, %v394_v14, %v402_v7  ;;  %v416_v59 = vsel %vm411_vm2, %v402_v7, %v394_v14 }
 0x16f   : > { %v432_v53 = vmul.f32 %v1781_v57, %v416_v59  ;;  %v433_v49 = vmul.f32 %v1784_v11, %v412_v63  ;;  %954 = vrot.lane.b32.xlu1 %v1735_v6, %s1383_s18  ;;  %v1819_v59 = vrot.slane %v1199_v12, %v1766_v27  ;;  %v1200_v63 = vld [vmem:[%s2229_s3 + $0x6] sm:$0x3]  ;;  %v1827_v6 = vrot.slane %v1199_v12, %v1768_v29 }
 0x170   : > { %v1846_v33 = vrot.slane %v1200_v63, %v1766_v27  ;;  %v1849_v13 = vrot.slane %v1200_v63, %v1768_v29 }
 0x171   : > { %v456_v7 = vmul.f32 %v1599_v37, %v432_v53  ;;  %v457_v38 = vmul.f32 %v1599_v37, %v433_v49  ;;  %v404_v14 = vpop.permute.xlu0 %403  ;;  %v481_v30 = vpop.permute.xlu1 %480 }
 0x172   : > { %v413_v26 = vsel %vm411_vm2, %v396_v15, %v404_v14  ;;  %v417_v58 = vsel %vm411_vm2, %v404_v14, %v396_v15  ;;  %v489_v37 = vsel %vm488_vm3, %v473_v16, %v481_v30  ;;  %v493_v49 = vsel %vm488_vm3, %v481_v30, %v473_v16 }
 0x173   : > { %v434_v53 = vmul.f32 %v1781_v57, %v417_v58  ;;  %v435_v12 = vmul.f32 %v1784_v11, %v413_v26  ;;  %872 = vrot.lane.b32.xlu1 %v1585_v34, %s1382_s17  ;;  %v510_v15 = vmul.f32 %v1812_v31, %v493_v49  ;;  %v511_v14 = vmul.f32 %v1815_v35, %v489_v37  ;;  %s1112_s17 = scalar_lea.sflag [#allocation3], %s243_s9 }
 0x174   : > { %v1855_v30 = vrot.slane %v1201_v10, %v1766_v27  ;;  %v1858_v26 = vrot.slane %v1201_v10, %v1768_v29  ;;  %v464_v58 = vadd.f32 %v456_v7, %v385_v18  ;;  %v465_v16 = vadd.f32 %v457_v38, %v386_v32 }
 0x175   : > { %v458_v8 = vmul.f32 %v1607_v39, %v434_v53  ;;  %v459_v62 = vmul.f32 %v1607_v39, %v435_v12  ;;  %v483_v63 = vpop.permute.xlu0 %482  ;;  %v559_v56 = vpop.permute.xlu1 %558  ;;  %v534_v49 = vmul.f32 %v1629_v45, %v510_v15  ;;  %v535_v37 = vmul.f32 %v1629_v45, %v511_v14 }
 0x176   : > { %v490_v52 = vsel %vm488_vm3, %v1746_v1, %v483_v63  ;;  %v494_v10 = vsel %vm488_vm3, %v483_v63, %v1746_v1  ;;  %v567_v53 = vsel %vm566_vm4, %v1748_v17, %v559_v56  ;;  %v571_v1 = vsel %vm566_vm4, %v559_v56, %v1748_v17  ;;  %v1202_v17 = vld [vmem:[%s2229_s3 + $0xc] sm:$0x3] }
 0x177   : > { %v466_v18 = vadd.f32 %v458_v8, %v387_v9  ;;  %v467_v32 = vadd.f32 %v459_v62, %v388_v41  ;;  %v512_v7 = vmul.f32 %v1812_v31, %v494_v10  ;;  %v513_v39 = vmul.f32 %v1815_v35, %v490_v52  ;;  %991 = vperm.xlu1 %1298, %v1487_v4  }
 0x178   : > { %v542_v38 = vadd.f32 %v534_v49, %v464_v58  ;;  %v543_v45 = vadd.f32 %v535_v37, %v465_v16  ;;  %v588_v52 = vmul.f32 %v1819_v59, %v571_v1  ;;  %v589_v8 = vmul.f32 %v1827_v6, %v567_v53 }
 0x179   : > { %v536_v41 = vmul.f32 %v1623_v44, %v512_v7  ;;  %v537_v62 = vmul.f32 %v1623_v44, %v513_v39  ;;  %v561_v9 = vpop.permute.xlu0 %560  ;;  %v637_v12 = vpop.permute.xlu1 %636  ;;  %v2272_v37 = vmov 10   ;;  %v1908_v1 = vrot.slane %v1202_v17, %v1766_v27 }
 0x17a   : > { %v568_v15 = vsel %vm566_vm4, %v1752_v19, %v561_v9  ;;  %v572_v14 = vsel %vm566_vm4, %v561_v9, %v1752_v19  ;;  %v645_v56 = vsel %vm644_vm5, %v1754_v0, %v637_v12  ;;  %v649_v44 = vsel %vm644_vm5, %v637_v12, %v1754_v0 }
 0x17b   : > { %v544_v58 = vadd.f32 %v536_v41, %v466_v18  ;;  %v545_v16 = vadd.f32 %v537_v62, %v467_v32  ;;  %v612_v63 = vmul.f32 %v1651_v51, %v588_v52  ;;  %v613_v49 = vmul.f32 %v1651_v51, %v589_v8  ;;  %1299 = vset.pattern.permute.xlu1 %v2272_v37 }
 0x17c   : > { %v590_v19 = vmul.f32 %v1819_v59, %v572_v14  ;;  %v591_v10 = vmul.f32 %v1827_v6, %v568_v15  ;;  %v666_v7 = vmul.f32 %v1846_v33, %v649_v44  ;;  %v667_v0 = vmul.f32 %v1849_v13, %v645_v56  ;;  %1027 = vperm.xlu1 %1299, %v1480_v3  }
 0x17d   : > { %v620_v39 = vadd.f32 %v612_v63, %v542_v38  ;;  %v621_v53 = vadd.f32 %v613_v49, %v543_v45  ;;  %v639_v18 = vpop.permute.xlu0 %638  ;;  %v715_v32 = vpop.permute.xlu1 %714  ;;  %v1911_v51 = vrot.slane %v1202_v17, %v1768_v29 }
 0x17e   : > { %v614_v41 = vmul.f32 %v1645_v50, %v590_v19  ;;  %v615_v62 = vmul.f32 %v1645_v50, %v591_v10  ;;  %v690_v52 = vmul.f32 %v1671_v55, %v666_v7  ;;  %v691_v8 = vmul.f32 %v1671_v55, %v667_v0 }
 0x17f   : > { %v646_v3 = vsel %vm644_vm5, %v1758_v22, %v639_v18  ;;  %v650_v38 = vsel %vm644_vm5, %v639_v18, %v1758_v22  ;;  %v723_v45 = vsel %vm722_vm6, %v1760_v23, %v715_v32  ;;  %v727_v50 = vsel %vm722_vm6, %v715_v32, %v1760_v23 }
 0x180   : > { %v622_v9 = vadd.f32 %v614_v41, %v544_v58  ;;  %v623_v12 = vadd.f32 %v615_v62, %v545_v16  ;;  %v698_v15 = vadd.f32 %v690_v52, %v620_v39  ;;  %v699_v55 = vadd.f32 %v691_v8, %v621_v53  ;;  %940 = vrot.lane.b32.xlu1 %v1543_v21, %s1383_s18 }
 0x181   : > { %v668_v14 = vmul.f32 %v1846_v33, %v650_v38  ;;  %v669_v56 = vmul.f32 %v1849_v13, %v646_v3  ;;  %v744_v22 = vmul.f32 %v1855_v30, %v723_v45  ;;  %v745_v44 = vmul.f32 %v1858_v26, %v727_v50  ;;  %v717_v17 = vpop.permute.xlu0 %716  ;;  %v793_v63 = vpop.permute.xlu1 %792 }
 0x182   : > { %v724_v23 = vsel %vm722_vm6, %v1773_v42, %v717_v17  ;;  %v728_v58 = vsel %vm722_vm6, %v717_v17, %v1773_v42  ;;  %v801_v21 = vsel %vm800_vm7, %v1775_v47, %v793_v63  ;;  %v805_v16 = vsel %vm800_vm7, %v793_v63, %v1775_v47 }
 0x183   : > { %v692_v49 = vmul.f32 %v1665_v54, %v668_v14  ;;  %v693_v37 = vmul.f32 %v1665_v54, %v669_v56  ;;  %v768_v19 = vmul.f32 %v1694_v61, %v744_v22  ;;  %v769_v10 = vmul.f32 %v1694_v61, %v745_v44 }
 0x184   : > { %v746_v7 = vmul.f32 %v1855_v30, %v724_v23  ;;  %v747_v42 = vmul.f32 %v1858_v26, %v728_v58  ;;  %v822_v0 = vmul.f32 %v1908_v1, %v801_v21  ;;  %v823_v39 = vmul.f32 %v1911_v51, %v805_v16  ;;  %942 = vrot.lane.b32.xlu1 %v1547_v25, %s1383_s18 }
 0x185   : > { %v700_v47 = vadd.f32 %v692_v49, %v622_v9  ;;  %v701_v53 = vadd.f32 %v693_v37, %v623_v12  ;;  %v776_v18 = vadd.f32 %v768_v19, %v698_v15  ;;  %v777_v32 = vadd.f32 %v769_v10, %v699_v55  ;;  %v795_v54 = vpop.permute.xlu0 %794  ;;  %v398_v41 = vpop.permute.xlu1 %397 }
 0x186   : > { %v770_v62 = vmul.f32 %v1688_v60, %v746_v7  ;;  %v771_v61 = vmul.f32 %v1688_v60, %v747_v42  ;;  %v846_v52 = vmul.f32 %v1713_v5, %v822_v0  ;;  %v847_v8 = vmul.f32 %v1713_v5, %v823_v39 }
 0x187   : > { %v802_v3 = vsel %vm800_vm7, %v1788_v20, %v795_v54  ;;  %v806_v25 = vsel %vm800_vm7, %v795_v54, %v1788_v20 }
 0x188   : > { %v778_v38 = vadd.f32 %v770_v62, %v700_v47  ;;  %v779_v45 = vadd.f32 %v771_v61, %v701_v53  ;;  %v1967_v50 = vadd.f32 %v846_v52, %v776_v18  ;;  %v1969_v9 = vadd.f32 %v847_v8, %v777_v32  ;;  %950 = vrot.lane.b32.xlu1 %v1585_v34, %s1383_s18  ;;  %v1055_v53 = vld [vmem:[%s2231_s5] sm:$0xf]  ;;  %s1304_s18 = scalar_lea.vmem %s1127_s13, 128 }
 0x189   : > { %v824_v60 = vmul.f32 %v1908_v1, %v802_v3  ;;  %v825_v5 = vmul.f32 %v1911_v51, %v806_v25  ;;  %v477_v12 = vpop.permute.xlu0 %476  ;;  %v555_v15 = vpop.permute.xlu1 %554  ;;  %1058 = vperm.xlu0 %1301, %v1055_v53   ;;  %v2275_v53 = vld [vmem:[#allocation15_spill] sm:$0xff]  ;;  %p1305_p11 = scmp.ne.s32.totalorder %s1127_s13, %s1304_s18  ;;  %p1312_p1 = scmp.lt.s32.totalorder %s1310_s20, %s1304_s18 }
 0x18b   : > { %v848_v55 = vmul.f32 %v1708_v2, %v824_v60  ;;  %v849_v14 = vmul.f32 %v1708_v2, %v825_v5  ;;  %v389_v2 = vmul.f32 %v1593_v36, %v1617_v43  ;;  %v390_v43 = vmul.f32 %v1593_v36, %v1637_v48  ;;  %v2273_v5 = vld [vmem:[#allocation10_spill] sm:$0xff]  ;;  %p1306_p12 = pnand %p1305_p11, %p1459_p5  ;;  %p1313_p2 = por %p1312_p1, %p1311_p0 }
 0x18c   : > { %1023 = vperm.xlu1 %1299, %v1487_v4  }
 0x18d   : > { %v406_v20 = vpop.permute.xlu0 %405  ;;  %v633_v56 = vpop.permute.xlu1 %632  ;;  %v1978_v22 = vadd.f32 %v848_v55, %v778_v38  ;;  %v1980_v44 = vadd.f32 %v849_v14, %v779_v45  ;;  %p1307_p13 = pneg %p1306_p12 }
 0x18e   : > { %v414_v34 = vsel %vm411_vm2, %v398_v41, %v406_v20  ;;  %v418_v17 = vsel %vm411_vm2, %v406_v20, %v398_v41 }
 0x18f   : > { %v436_v63 = vmul.f32 %v1781_v57, %v418_v17  ;;  %v437_v23 = vmul.f32 %v1784_v11, %v414_v34  ;;  %p1314_p3 = pnand %p1313_p2, %p1307_p13 }
 0x191   : > { %v460_v4 = vmul.f32 %v1563_v28, %v436_v63  ;;  %v485_v58 = vpop.permute.xlu0 %484  ;;  %v711_v21 = vpop.permute.xlu1 %710  ;;  %v461_v37 = vmul.f32 %v1563_v28, %v437_v23  ;;  %v1203_v23 = vld [vmem:[%s2229_s3 + $0xe] sm:$0x3] }
 0x192   : > { %v491_v16 = vsel %vm488_vm3, %v477_v12, %v485_v58  ;;  %v495_v49 = vsel %vm488_vm3, %v485_v58, %v477_v12 }
 0x193   : > { %v468_v19 = vadd.f32 %v460_v4, %v389_v2  ;;  %v514_v10 = vmul.f32 %v1812_v31, %v495_v49  ;;  %v515_v7 = vmul.f32 %v1815_v35, %v491_v16  ;;  %v469_v32 = vadd.f32 %v461_v37, %v390_v43  ;;  %v2274_v2 = vld [vmem:[#allocation12_spill] sm:$0xff] }
 0x195   : > { %v538_v42 = vmul.f32 %v1613_v40, %v514_v10  ;;  %v539_v0 = vmul.f32 %v1613_v40, %v515_v7  ;;  %v563_v39 = vpop.permute.xlu0 %562  ;;  %v789_v47 = vpop.permute.xlu1 %788  ;;  %v2043_v10 = vrot.slane %v1203_v23, %v1768_v29 }
 0x196   : > { %v569_v28 = vsel %vm566_vm4, %v555_v15, %v563_v39  ;;  %v573_v18 = vsel %vm566_vm4, %v563_v39, %v555_v15  ;;  %v1204_v39 = vld [vmem:[%s2229_s3 + $0x10] sm:$0x3] }
 0x197   : > { %v592_v36 = vmul.f32 %v1819_v59, %v573_v18  ;;  %v593_v48 = vmul.f32 %v1827_v6, %v569_v28  ;;  %v546_v54 = vadd.f32 %v538_v42, %v468_v19  ;;  %v547_v40 = vadd.f32 %v539_v0, %v469_v32 }
 0x198   : > { %v2040_v19 = vrot.slane %v1203_v23, %v1766_v27 }
 0x199   : > { %v616_v41 = vmul.f32 %v1635_v46, %v592_v36  ;;  %v617_v62 = vmul.f32 %v1635_v46, %v593_v48  ;;  %v641_v61 = vpop.permute.xlu0 %640  ;;  %v867_v52 = vpop.permute.xlu1 %866 }
 0x19a   : > { %v647_v8 = vsel %vm644_vm5, %v633_v56, %v641_v61  ;;  %v651_v3 = vsel %vm644_vm5, %v641_v61, %v633_v56 }
 0x19b   : > { %v624_v25 = vadd.f32 %v616_v41, %v546_v54  ;;  %v625_v38 = vadd.f32 %v617_v62, %v547_v40  ;;  %v670_v45 = vmul.f32 %v1846_v33, %v651_v3  ;;  %v671_v60 = vmul.f32 %v1849_v13, %v647_v8  ;;  %v2276_v3 = vld [vmem:[#allocation17_spill] sm:$0xff] }
 0x19c   : > { %v2058_v54 = vrot.slane %v1204_v39, %v1766_v27  ;;  %v2061_v40 = vrot.slane %v1204_v39, %v1768_v29 }
 0x19d   : > { %v694_v12 = vmul.f32 %v2273_v5, %v670_v45  ;;  %v695_v15 = vmul.f32 %v2273_v5, %v671_v60  ;;  %v719_v55 = vpop.permute.xlu0 %718  ;;  %v945_v46 = vpop.permute.xlu1 %944 }
 0x19e   : > { %v725_v14 = vsel %vm722_vm6, %v711_v21, %v719_v55  ;;  %v729_v20 = vsel %vm722_vm6, %v719_v55, %v711_v21  ;;  %v2277_v55 = vld [vmem:[#allocation22_spill] sm:$0xff] }
 0x19f   : > { %v702_v34 = vadd.f32 %v694_v12, %v624_v25  ;;  %v703_v56 = vadd.f32 %v695_v15, %v625_v38  ;;  %v748_v17 = vmul.f32 %v1855_v30, %v725_v14  ;;  %v749_v63 = vmul.f32 %v1858_v26, %v729_v20 }
 0x1a1   : > { %v772_v4 = vmul.f32 %v2274_v2, %v748_v17  ;;  %v773_v58 = vmul.f32 %v2274_v2, %v749_v63  ;;  %v797_v16 = vpop.permute.xlu0 %796  ;;  %v2032_v49 = vpop.permute.xlu1 %864 }
 0x1a2   : > { %v803_v21 = vsel %vm800_vm7, %v789_v47, %v797_v16  ;;  %v807_v37 = vsel %vm800_vm7, %v797_v16, %v789_v47 }
 0x1a3   : > { %v780_v7 = vadd.f32 %v772_v4, %v702_v34  ;;  %v781_v43 = vadd.f32 %v773_v58, %v703_v56  ;;  %v826_v42 = vmul.f32 %v1908_v1, %v803_v21  ;;  %v827_v0 = vmul.f32 %v1911_v51, %v807_v37 }
 0x1a5   : > { %v850_v28 = vmul.f32 %v2275_v53, %v826_v42  ;;  %v851_v47 = vmul.f32 %v2275_v53, %v827_v0  ;;  %v875_v18 = vpop.permute.xlu0 %874  ;;  %v400_v32 = vpop.permute.xlu1 %399 }
 0x1a6   : > { %v881_v36 = vsel %vm878_vm8, %v867_v52, %v875_v18  ;;  %v885_v48 = vsel %vm878_vm8, %v875_v18, %v867_v52 }
 0x1a7   : > { %v858_v41 = vadd.f32 %v850_v28, %v780_v7  ;;  %v859_v62 = vadd.f32 %v851_v47, %v781_v43  ;;  %v904_v61 = vmul.f32 %v2040_v19, %v881_v36  ;;  %v905_v8 = vmul.f32 %v2043_v10, %v885_v48 }
 0x1a9   : > { %v928_v25 = vmul.f32 %v2276_v3, %v904_v61  ;;  %v929_v38 = vmul.f32 %v2276_v3, %v905_v8  ;;  %v953_v45 = vpop.permute.xlu0 %952  ;;  %v479_v60 = vpop.permute.xlu1 %478  ;;  %v2279_v3 = vld [vmem:[#allocation13_spill] sm:$0xff] }
 0x1aa   : > { %v959_v52 = vsel %vm956_vm9, %v945_v46, %v953_v45  ;;  %v963_v27 = vsel %vm956_vm9, %v953_v45, %v945_v46  ;;  %v2281_v45 = vld [vmem:[#allocation21_spill] sm:$0xff] }
 0x1ab   : > { %v982_v29 = vmul.f32 %v2058_v54, %v959_v52  ;;  %v983_v5 = vmul.f32 %v2061_v40, %v963_v27  ;;  %v936_v12 = vadd.f32 %v928_v25, %v858_v41  ;;  %v937_v15 = vadd.f32 %v929_v38, %v859_v62  ;;  %v2278_v41 = vld [vmem:[#allocation7_spill] sm:$0xff]  ;;  %v2280_v25 = vld [vmem:[#allocation5_spill] sm:$0xff]  ;;  %v2282_v52 = vld [vmem:[#allocation6_spill] sm:$0xff] }
 0x1ac   : > { %v391_v38 = vmul.f32 %v2280_v25, %v2279_v3 }
 0x1ad   : > { %v1006_v14 = vmul.f32 %v2277_v55, %v982_v29  ;;  %v1007_v20 = vmul.f32 %v2277_v55, %v983_v5  ;;  %v557_v34 = vpop.permute.xlu1 %556 }
 0x1af   : > { %v2075_v56 = vadd.f32 %v1006_v14, %v936_v12  ;;  %v2077_v17 = vadd.f32 %v1007_v20, %v937_v15  ;;  %v2283_v14 = vld [vmem:[#allocation8_spill] sm:$0xff] }
 0x1b1   : > { %v635_v63 = vpop.permute.xlu1 %634 }
 0x1b5   : > { %v713_v23 = vpop.permute.xlu1 %712 }
 0x1b9   : > { %v791_v2 = vpop.permute.xlu1 %790 }
 0x1bd   : > { %v869_v4 = vpop.permute.xlu1 %868 }
 0x1c1   : > { %v947_v46 = vpop.permute.xlu1 %946 }
 0x1c5   : > { %v408_v58 = vpop.permute.xlu1 %407 }
 0x1c6   : > { %v415_v43 = vsel %vm411_vm2, %v400_v32, %v408_v58  ;;  %v419_v42 = vsel %vm411_vm2, %v408_v58, %v400_v32 }
 0x1c7   : > { %v438_v28 = vmul.f32 %v1781_v57, %v419_v42  ;;  %v439_v47 = vmul.f32 %v1784_v11, %v415_v43 }
 0x1c9   : > { %v487_v16 = vpop.permute.xlu1 %486  ;;  %v462_v62 = vmul.f32 %v2278_v41, %v438_v28  ;;  %v463_v61 = vmul.f32 %v2278_v41, %v439_v47 }
 0x1ca   : > { %v492_v0 = vsel %vm488_vm3, %v479_v60, %v487_v16  ;;  %v496_v39 = vsel %vm488_vm3, %v487_v16, %v479_v60  ;;  %v392_v60 = vmul.f32 %v2280_v25, %v2281_v45 }
 0x1cb   : > { %v516_v18 = vmul.f32 %v1812_v31, %v496_v39  ;;  %v517_v36 = vmul.f32 %v1815_v35, %v492_v0 }
 0x1cc   : > { %v471_v55 = vadd.f32 %v463_v61, %v392_v60  ;;  %v2288_v60 = vld [vmem:[#allocation18_spill] sm:$0xff] }
 0x1cd   : > { %v565_v21 = vpop.permute.xlu1 %564  ;;  %v540_v27 = vmul.f32 %v2282_v52, %v516_v18  ;;  %v541_v29 = vmul.f32 %v2282_v52, %v517_v36  ;;  %v2285_v18 = vld [vmem:[#allocation11_spill] sm:$0xff] }
 0x1ce   : > { %v570_v48 = vsel %vm566_vm4, %v557_v34, %v565_v21  ;;  %v574_v32 = vsel %vm566_vm4, %v565_v21, %v557_v34 }
 0x1cf   : > { %v594_v31 = vmul.f32 %v1819_v59, %v574_v32  ;;  %v595_v35 = vmul.f32 %v1827_v6, %v570_v48  ;;  %v470_v59 = vadd.f32 %v462_v62, %v391_v38  ;;  %v2286_v62 = vld [vmem:[#allocation14_spill] sm:$0xff] }
 0x1d1   : > { %v643_v37 = vpop.permute.xlu1 %642  ;;  %v618_v20 = vmul.f32 %v2283_v14, %v594_v31  ;;  %v619_v34 = vmul.f32 %v2283_v14, %v595_v35  ;;  %v548_v58 = vadd.f32 %v540_v27, %v470_v59  ;;  %v2287_v35 = vld [vmem:[#allocation16_spill] sm:$0xff] }
 0x1d2   : > { %v648_v8 = vsel %vm644_vm5, %v635_v63, %v643_v37  ;;  %v652_v57 = vsel %vm644_vm5, %v643_v37, %v635_v63 }
 0x1d3   : > { %v672_v5 = vmul.f32 %v1846_v33, %v652_v57  ;;  %v673_v12 = vmul.f32 %v1849_v13, %v648_v8  ;;  %v549_v13 = vadd.f32 %v541_v29, %v471_v55  ;;  %v626_v28 = vadd.f32 %v618_v20, %v548_v58 }
 0x1d5   : > { %v721_v7 = vpop.permute.xlu1 %720 }
 0x1d6   : > { %v726_v15 = vsel %vm722_vm6, %v713_v23, %v721_v7  ;;  %v730_v6 = vsel %vm722_vm6, %v721_v7, %v713_v23  ;;  %v863_v23 = vpop.permute.xlu0 %862  ;;  %v2284_v7 = vld [vmem:[#allocation9_spill] sm:$0xff] }
 0x1d7   : > { %v750_v16 = vmul.f32 %v1855_v30, %v726_v15  ;;  %v751_v21 = vmul.f32 %v1858_v26, %v730_v6  ;;  %v696_v43 = vmul.f32 %v2284_v7, %v672_v5  ;;  %v697_v42 = vmul.f32 %v2284_v7, %v673_v12 }
 0x1d8   : > { %v627_v30 = vadd.f32 %v619_v34, %v549_v13 }
 0x1d9   : > { %v799_v53 = vpop.permute.xlu1 %798  ;;  %v774_v36 = vmul.f32 %v2285_v18, %v750_v16  ;;  %v775_v48 = vmul.f32 %v2285_v18, %v751_v21  ;;  %v704_v41 = vadd.f32 %v696_v43, %v626_v28  ;;  %v2289_v18 = vld [vmem:[#allocation20_spill] sm:$0xff] }
 0x1da   : > { %v804_v63 = vsel %vm800_vm7, %v791_v2, %v799_v53  ;;  %v808_v33 = vsel %vm800_vm7, %v799_v53, %v791_v2 }
 0x1db   : > { %v828_v2 = vmul.f32 %v1908_v1, %v804_v63  ;;  %v829_v53 = vmul.f32 %v1911_v51, %v808_v33  ;;  %v705_v1 = vadd.f32 %v697_v42, %v627_v30 }
 0x1dd   : > { %v877_v11 = vpop.permute.xlu1 %876  ;;  %v852_v51 = vmul.f32 %v2286_v62, %v828_v2  ;;  %v853_v61 = vmul.f32 %v2286_v62, %v829_v53  ;;  %v783_v31 = vadd.f32 %v775_v48, %v705_v1  ;;  %v2290_v62 = vld [vmem:[#allocation19_spill] sm:$0xff] }
 0x1de   : > { %v882_v0 = vsel %vm878_vm8, %v869_v4, %v877_v11  ;;  %v886_v39 = vsel %vm878_vm8, %v877_v11, %v869_v4  ;;  %v871_v11 = vpop.permute.xlu0 %870 }
 0x1df   : > { %v906_v32 = vmul.f32 %v2040_v19, %v882_v0  ;;  %v907_v4 = vmul.f32 %v2043_v10, %v886_v39  ;;  %v861_v45 = vadd.f32 %v853_v61, %v783_v31  ;;  %v879_v33 = vsel %vm878_vm8, %v863_v23, %v871_v11 }
 0x1e0   : > { %v883_v58 = vsel %vm878_vm8, %v871_v11, %v863_v23  ;;  %v900_v42 = vmul.f32 %v2040_v19, %v879_v33 }
 0x1e1   : > { %v955_v37 = vpop.permute.xlu1 %954  ;;  %v930_v3 = vmul.f32 %v2287_v35, %v906_v32  ;;  %v931_v25 = vmul.f32 %v2287_v35, %v907_v4  ;;  %v901_v0 = vmul.f32 %v2043_v10, %v883_v58 }
 0x1e2   : > { %v960_v26 = vsel %vm956_vm9, %v947_v46, %v955_v37  ;;  %v964_v47 = vsel %vm956_vm9, %v955_v37, %v947_v46  ;;  %v782_v46 = vadd.f32 %v774_v36, %v704_v41  ;;  %v988_v5 = vpop.permute.xlu0 %987  ;;  %v924_v36 = vmul.f32 %v2289_v18, %v900_v42 }
 0x1e3   : > { %v984_v8 = vmul.f32 %v2058_v54, %v960_v26  ;;  %v985_v57 = vmul.f32 %v2061_v40, %v964_v47  ;;  %v939_v15 = vadd.f32 %v931_v25, %v861_v45  ;;  %v925_v48 = vmul.f32 %v2289_v18, %v901_v0 }
 0x1e4   : > { %v860_v38 = vadd.f32 %v852_v51, %v782_v46 }
 0x1e5   : > { %v1008_v52 = vmul.f32 %v2288_v60, %v984_v8  ;;  %v1009_v27 = vmul.f32 %v2288_v60, %v985_v57  ;;  %v873_v29 = vpop.permute.xlu1 %872  ;;  %v932_v8 = vadd.f32 %v924_v36, %v1967_v50  ;;  %v933_v57 = vadd.f32 %v925_v48, %v1969_v9 }
 0x1e6   : > { %v938_v12 = vadd.f32 %v930_v3, %v860_v38  ;;  %v1032_v14 = vpop.permute.xlu0 %1031  ;;  %v880_v2 = vsel %vm878_vm8, %v2032_v49, %v873_v29  ;;  %v884_v23 = vsel %vm878_vm8, %v873_v29, %v2032_v49 }
 0x1e7   : > { %v1017_v59 = vadd.f32 %v1009_v27, %v939_v15  ;;  %v902_v49 = vmul.f32 %v2040_v19, %v880_v2  ;;  %v903_v32 = vmul.f32 %v2043_v10, %v884_v23 }
 0x1e8   : > { %v1016_v55 = vadd.f32 %v1008_v52, %v938_v12 }
 0x1e9   : > { %v1041_v20 = vadd.f32 %v1032_v14, %v1017_v59  ;;  %v926_v51 = vmul.f32 %v2290_v62, %v902_v49  ;;  %v927_v61 = vmul.f32 %v2290_v62, %v903_v32 }
 0x1ea   : > { %v1040_v34 = vadd.f32 %v1032_v14, %v1016_v55  ;;  %v949_v39 = vpop.permute.xlu0 %948 }
 0x1eb   : > { %v1049_v7 = vmax.f32 %v1041_v20, 0.0  ;;  %v934_v25 = vadd.f32 %v926_v51, %v1978_v22  ;;  %v935_v38 = vadd.f32 %v927_v61, %v1980_v44  ;;  %v1050_v44 = vld [vmem:[%s2230_s4] sm:$0x3] }
 0x1ec   : > { %v1048_v43 = vmax.f32 %v1040_v34, 0.0 }
 0x1ee   : > { %v1020_v9 = vpop.permute.xlu0 %1019 }
 0x1f2   : > { %v992_v6 = vpop.permute.xlu1 %991 }
 0x1f7   : > { %v1028_v63 = vpop.permute.xlu1 %1027 }
 0x1f8   : > { %v1038_v13 = vadd.f32 %v1028_v63, %v2075_v56  ;;  %v1039_v16 = vadd.f32 %v1028_v63, %v2077_v17 }
 0x1fa   : > { %v1046_v21 = vmax.f32 %v1038_v13, 0.0  ;;  %v1047_v37 = vmax.f32 %v1039_v16, 0.0 }
 0x1fb   : > { %v941_v56 = vpop.permute.xlu1 %940 }
 0x1fc   : > { %v957_v17 = vsel %vm956_vm9, %v941_v56, %v949_v39  ;;  %v961_v53 = vsel %vm956_vm9, %v949_v39, %v941_v56  ;;  %v1054_v28 = vpack.c.bf16 %v1049_v7, %v1047_v37  ;;  %v1053_v30 = vpack.c.bf16 %v1048_v43, %v1046_v21 }
 0x1fd   : > { %v978_v26 = vmul.f32 %v2058_v54, %v957_v17  ;;  %v979_v47 = vmul.f32 %v2061_v40, %v961_v53 }
 0x1fe   : > { %1077 = vmatprep.subr.bf16.mxu1 %v1054_v28 }
 0x1ff   : > { %1078 = vmatpush1.bf16.msra.mxu1 %v1053_v30  ;;  %v943_v4 = vpop.permute.xlu1 %942  ;;  %v1002_v41 = vmul.f32 %v988_v5, %v978_v26  ;;  %v1003_v1 = vmul.f32 %v988_v5, %v979_v47 }
 0x201   : > { %v1010_v10 = vadd.f32 %v1002_v41, %v932_v8  ;;  %v1011_v31 = vadd.f32 %v1003_v1, %v933_v57 }
 0x203   : > { %v951_v11 = vpop.permute.xlu1 %950  ;;  %v1034_v60 = vadd.f32 %v1020_v9, %v1010_v10  ;;  %v1035_v52 = vadd.f32 %v1020_v9, %v1011_v31 }
 0x204   : > { %v958_v46 = vsel %vm956_vm9, %v943_v4, %v951_v11  ;;  %v962_v19 = vsel %vm956_vm9, %v951_v11, %v943_v4 }
 0x205   : > { %v980_v35 = vmul.f32 %v2058_v54, %v958_v46  ;;  %v981_v3 = vmul.f32 %v2061_v40, %v962_v19  ;;  %v1042_v15 = vmax.f32 %v1034_v60, 0.0  ;;  %v1043_v54 = vmax.f32 %v1035_v52, 0.0 }
 0x207   : > { %v1004_v50 = vmul.f32 %v992_v6, %v980_v35  ;;  %v1005_v45 = vmul.f32 %v992_v6, %v981_v3  ;;  %v1024_v24 = vpop.permute.xlu1 %1023  ;;  %v1059_v6 = vpop.permute.xlu0 %1058 }
 0x209   : > { %v1012_v27 = vadd.f32 %v1004_v50, %v934_v25  ;;  %v1013_v29 = vadd.f32 %v1005_v45, %v935_v38 }
 0x20b   : > { %v1036_v5 = vadd.f32 %v1024_v24, %v1012_v27  ;;  %v1037_v12 = vadd.f32 %v1024_v24, %v1013_v29 }
 0x20d   : > { %v1044_v59 = vmax.f32 %v1036_v5, 0.0  ;;  %v1045_v40 = vmax.f32 %v1037_v12, 0.0 }
 0x20f   : > { %v1051_v55 = vpack.c.bf16 %v1044_v59, %v1042_v15  ;;  %v1052_v22 = vpack.c.bf16 %v1045_v40, %v1043_v54 }
 0x211   : > { %1079 = vmatprep.subr.bf16.mxu1 %v1052_v22 }
 0x212   : > { %1080 = vmatpush1.bf16.msra.mxu1 %v1051_v55 }
 0x215   : > { %1205 = vmatmul.mubr.msk.bf16.vlgmr.msra.gmra.mxu1 %vm1061_vm10, %v1050_v44 }
 0x2d5   : > { %v1099_v14 = vpop.f32.mrf.mxu1 }
 0x2d6   : > { %v1100_v34 = vadd.f32 %v1099_v14, %v1059_v6 }
 0x2d7   : > { %v1101_v20 = vpop.f32.mrf.mxu1 }
 0x2d8   : > { %v1102_v63 = vadd.f32 %v1101_v20, %v1059_v6 }
 0x2d9   : > { %v1103_v33 = vpop.f32.mrf.mxu1 }
 0x2da   : > { %v1108_v58 = vcombine.low %v1100_v34, %v1102_v63 }
 0x2db   : > { %v1104_v13 = vpop.f32.mrf.mxu1 }
 0x2dc   : > { %1110 = vst [vmem:[%s245_s12] sm:$0xff] %v1108_v58 }
 0x2dd   : > { %1317 = shalt.err (!%p1314_p3)
}
 0x2de   : > { %s1318_s26 = scalar_lea.hbm %s2191_s16, 128  ;;  %s1322_s9 = scalar_lea.hbm %s2232_s6, 256 }
 0x2df   : > { %p1319_p4 = scmp.ne.s32.totalorder %s2191_s16, %s1318_s26  ;;  %p1323_p9 = scmp.lt.s32.totalorder %s2191_s16, %s2232_s6 }
 0x2e0   : > { %p1324_p10 = scmp.lt.s32.totalorder %s1322_s9, %s1318_s26 }
 0x2e1   : > { %p1320_p7 = pnand %p1319_p4, %p1459_p5 }
 0x2e2   : > { %p1325_p11 = por %p1324_p10, %p1323_p9 }
 0x2e3   : > { %p1321_p8 = pneg %p1320_p7 }
 0x2e5   : > { %p1326_p12 = pnand %p1325_p11, %p1321_p8 }
 0x2e7   : > { %1329 = shalt.err (!%p1326_p12)
}
 0x2e8   : > { %1212 = dma.vmem_to_hbm [thread:$0]  (%p1459_p5), %s1127_s13, 128, %s2191_s16, %s1112_s17  }
 0x2e9 PF: > { %p1218_p13 = scmp.ge.s32.totalorder %s1364_s24, 2  ;;  %s1138_s12 = sand.u32 1, %s1352_s21  }
 0x2ea   : > { %s1139_s14 = scalar_lea.sflag [#allocation3], %s1138_s12 }
 0x2eb   : > { %p1215_p0 = pnand %p1218_p13, %p1463_p6 }
 0x2ed   : > { %p1216_p1 = pneg %p1215_p0 }
 0x2ef   : > { %1347 = dma.done.wait (%p1216_p1), %s1139_s14, 128  }
 0x2f0   : > { %1349 = vsyncadd (%p1216_p1), %s1139_s14, 4294967168  ;;  %p16_p2 = scmp.ge.s32.totalorder %s1446_s27, 4   ;;  %s2291_s21 = smov %s1356_s22 }
 0x2f1   : > { %s2292_s22 = smov %s1360_s23  ;;  %s2293_s23 = smov %s1457_s30 }
 0x2f2   : > { %s2294_s24 = smov %s1446_s27  ;;  %18 = sbr.rel (!%p16_p2) target bundleno = 3 (0x3), region = 86 }
 0x2f7   :  { %1144 = vsyncpa [#allocation3], 1 }
 0x2f8   :  { %1146 = vsyncpa [#allocation3 + $0x1], 1 }

</bundles_post_ra>
